<compile_context>
chip_gen: v6e
topology: v6e:2x2x1
jax: 0.10.0
libtpu: 0.0.40
codegen_flags: <defaults>
</compile_context>

<pallas_src>
import functools
from typing import List

import jax
import jax.numpy as jnp
from jax.experimental import pallas as pl
from jax.experimental.pallas import tpu as pltpu

BN_EPS = 1e-5


def num_split(num: int, divider: int) -> List[int]:
    nums = [num // divider] * divider
    for index in range(num % divider):
        nums[index] += 1
    return nums


def _round_up(x: int, m: int) -> int:
    return ((x + m - 1) // m) * m


# ---------------------------------------------------------------------------
# Fused Branch kernel: lane-dense flattened-spatial max-pool per strip
# (running-max accumulator across the reduction grid axis) -> S per-strip
# MXU dots with BN folded into weight/bias -> (N, DIM_OUT) output.
# ---------------------------------------------------------------------------
def _branch_kernel(x_ref, w_ref, b_ref, o_ref, acc_ref, *, tq, q_bounds, d_info):
    # x_ref:   (TN, C, TQ)     lane-dense block of the flattened feature map
    # w_ref:   (S, C, DPAD)    per-strip BN-folded weights (zero-padded to DPAD)
    # b_ref:   (S, 1, DPAD)    per-strip BN-folded biases
    # o_ref:   (TN, DIM_OUT)
    # acc_ref: (S, TN, C)      per-strip running max accumulators (f32)
    k = pl.program_id(1)

    @pl.when(k == 0)
    def _init():
        acc_ref[...] = jnp.full(acc_ref.shape, -jnp.inf, dtype=acc_ref.dtype)

    x = x_ref[...]                                                  # (TN, C, TQ)
    # Global flattened-spatial position of each lane in this block.
    q = k * tq + jax.lax.broadcasted_iota(jnp.int32, (1, 1, tq), 2)

    for s_idx, (q0, q1) in enumerate(q_bounds):
        # Skip strips that do not intersect this spatial block.
        @pl.when((k * tq < q1) & ((k + 1) * tq > q0))
        def _update(s_idx=s_idx, q0=q0, q1=q1):
            in_strip = (q >= q0) & (q < q1)                         # (1, 1, TQ)
            # One wide lane-dense masked max (padded / out-of-strip lanes -> -inf).
            m = jnp.max(jnp.where(in_strip, x, -jnp.inf), axis=2)   # (TN, C)
            acc_ref[s_idx] = jnp.maximum(acc_ref[s_idx], m.astype(acc_ref.dtype))

    @pl.when(k == pl.num_programs(1) - 1)
    def _finalize():
        for s_idx, (off, d_i) in enumerate(d_info):
            y = jnp.dot(acc_ref[s_idx], w_ref[s_idx],
                        preferred_element_type=jnp.float32)         # (TN, DPAD)
            y = y + b_ref[s_idx]                                    # + (1, DPAD)
            o_ref[:, off:off + d_i] = y[:, :d_i].astype(o_ref.dtype)


def _select_tiles(n, c, hw, itemsize, in_buf_budget):
    """Pick (tn, tq): batch tile and flattened-spatial tile (one input buffer)."""
    row_bytes = c * hw * itemsize
    if min(n, 8) * row_bytes <= in_buf_budget:
        # Path A: whole flattened spatial axis per block (kq == 1).
        tq = hw
        if n * row_bytes <= in_buf_budget:
            tn = n
        else:
            tn = min(256, max(8, ((in_buf_budget // row_bytes) // 8) * 8))
        if n >= 16 and tn >= n:
            # Split the parallel batch axis so both v7x TensorCores get work.
            tn = max(8, _round_up((n + 1) // 2, 8))
        return tn, tq
    # Path B: tile the flattened spatial axis in lane-dense (x128) chunks.
    tn = n if n <= 8 else 8
    tq = max(128, ((in_buf_budget // (tn * c * itemsize)) // 128) * 128)
    tq = min(tq, _round_up(hw, 128))
    return tn, tq


def branch_forward(feat_map, params, *, total_vmem_budget=40 * 1024 * 1024):
    n, c, h, w = feat_map.shape
    s = len(params)
    assert h >= s, "each strip needs at least one row (H >= num_strips)"
    hw = h * w

    h_parts = num_split(h, s)
    d_parts = [int(p["w"].shape[1]) for p in params]
    dim_out = sum(d_parts)
    dpad = _round_up(max(d_parts), 128)

    # Static strip boundaries on the flattened spatial axis (H*W columns).
    q_bounds, off = [], 0
    for h_i in h_parts:
        q_bounds.append((off * w, (off + h_i) * w))
        off += h_i

    # Static output-column layout.
    d_info, d_off = [], 0
    for d_i in d_parts:
        d_info.append((d_off, d_i))
        d_off += d_i

    # Fold BN (inference) into weight + bias; stack per strip, lane-padded to DPAD.
    #   W'_s = W_s * gamma_s * rsqrt(var_s + eps)
    #   b'_s = beta_s - mean_s * gamma_s * rsqrt(var_s + eps)
    w_stack, b_stack = [], []
    for p, d_i in zip(params, d_parts):
        scale = p["gamma"][0] * jax.lax.rsqrt(p["var"][0] + BN_EPS)   # (d_i,)
        w_fold = (p["w"] * scale[None, :]).astype(jnp.float32)        # (C, d_i)
        b_fold = (p["beta"][0] - p["mean"][0] * scale).astype(jnp.float32)
        w_stack.append(jnp.pad(w_fold, ((0, 0), (0, dpad - d_i))))
        b_stack.append(jnp.pad(b_fold, (0, dpad - d_i))[None, :])
    w_stk = jnp.stack(w_stack, axis=0)          # (S, C, DPAD)
    b_stk = jnp.stack(b_stack, axis=0)          # (S, 1, DPAD)

    # Lane-dense flattened input (free reshape: NCHW is contiguous along H*W).
    x_flat = feat_map.reshape(n, c, hw)
    itemsize = x_flat.dtype.itemsize

    # --- tile selection from the VMEM budget --------------------------------
    fixed_bytes = 2 * (s * c * dpad + s * dpad) * 4            # weight+bias (dbl-buffered)
    out_bytes = 2 * min(max(n, 8), 256) * dim_out * 4          # output (upper bound)
    acc_bytes = s * _round_up(min(max(n, 8), 256), 8) * _round_up(c, 128) * 4
    in_buf_budget = max(2 * 1024 * 1024,
                        (total_vmem_budget - fixed_bytes - out_bytes - acc_bytes) // 2)

    tn, tq = _select_tiles(n, c, hw, itemsize, in_buf_budget)
    gn = pl.cdiv(n, tn)
    kq = pl.cdiv(hw, tq)

    vmem_est = (2 * tn * c * tq * itemsize                      # input double-buffer
                + fixed_bytes
                + 2 * tn * dim_out * 4                          # output double-buffer
                + s * _round_up(tn, 8) * _round_up(c, 128) * 4)  # acc scratch
    # Leave headroom; never request more than 48 MiB (v7x has 64 MiB VMEM / TC).
    vmem_limit = int(min(max(int(vmem_est * 1.25) + (4 << 20), 32 << 20), 48 << 20))

    kernel = functools.partial(_branch_kernel, tq=tq,
                               q_bounds=tuple(q_bounds), d_info=tuple(d_info))

    return pl.pallas_call(
        kernel,
        out_shape=jax.ShapeDtypeStruct((n, dim_out), feat_map.dtype),
        grid=(gn, kq),
        in_specs=[
            pl.BlockSpec((tn, c, tq), lambda i, k: (i, 0, k)),
            pl.BlockSpec((s, c, dpad), lambda i, k: (0, 0, 0)),
            pl.BlockSpec((s, 1, dpad), lambda i, k: (0, 0, 0)),
        ],
        out_specs=pl.BlockSpec((tn, dim_out), lambda i, k: (i, 0)),
        scratch_shapes=[pltpu.VMEM((s, tn, c), jnp.float32)],
        compiler_params=pltpu.CompilerParams(
            dimension_semantics=("parallel", "arbitrary"),
            vmem_limit_bytes=vmem_limit,
        ),
    )(x_flat, w_stk, b_stk)


# ---------------------------------------------------------------------------
# Deterministic parameter construction (synthetic, no checkpoint).
# ---------------------------------------------------------------------------
def init_branch_params(key, in_channels, dim_out, num_strips):
    params = []
    for d_i in num_split(dim_out, num_strips):
        key, kw, kg, kb, km, kv = jax.random.split(key, 6)
        bound = (6.0 / (in_channels + d_i)) ** 0.5            # xavier_uniform
        w = jax.random.uniform(kw, (in_channels, d_i), jnp.float32,
                               minval=-bound, maxval=bound)
        gamma = jax.random.uniform(kg, (1, d_i), jnp.float32, 0.5, 1.5)
        beta = 0.1 * jax.random.normal(kb, (1, d_i), jnp.float32)
        mean = 0.1 * jax.random.normal(km, (1, d_i), jnp.float32)
        var = jax.random.uniform(kv, (1, d_i), jnp.float32, 0.5, 1.5)
        params.append(dict(w=w, gamma=gamma, beta=beta, mean=mean, var=var))
    return params


# Pure-JAX reference (unfused, unfolded BN) for a correctness check.
def branch_reference(feat_map, params):
    n, c, h, w = feat_map.shape
    h_parts = num_split(h, len(params))
    outs, h_off = [], 0
    for h_i, p in zip(h_parts, params):
        strip = feat_map[:, :, h_off:h_off + h_i, :]
        h_off += h_i
        pooled = jnp.max(strip, axis=(2, 3))
        y = jnp.dot(pooled, p["w"], precision=jax.lax.Precision.HIGHEST)
        y = (y - p["mean"]) * jax.lax.rsqrt(p["var"] + BN_EPS) * p["gamma"] + p["beta"]
        outs.append(y)
    return jnp.concatenate(outs, axis=1)


if __name__ == "__main__":
    # Small shapes consistent with the module.
    N, C, H, W = 2, 8, 16, 16
    DIM_OUT, NUM_STRIPS = 32, 3          # dim parts: [11, 11, 10]; H parts: [6, 5, 5]

    key = jax.random.PRNGKey(0)
    k_x, k_p = jax.random.split(key)
    feat_map = jax.random.normal(k_x, (N, C, H, W), jnp.float32)
    params = init_branch_params(k_p, C, DIM_OUT, NUM_STRIPS)

    out = jax.block_until_ready(branch_forward(feat_map, params))
    ref = branch_reference(feat_map, params)

    assert out.shape == (N, DIM_OUT), out.shape
    max_err = float(jnp.max(jnp.abs(out - ref)))
    assert jnp.allclose(out, ref, atol=1e-4, rtol=1e-4), max_err

    print("KERNEL_OK")
</pallas_src>

<mosaic_0001>
module attributes {stable_mosaic.version = 11 : i64} {
  func.func @_branch_kernel(%arg0: i32, %arg1: i32, %arg2: memref<2x8x256xf32, #tpu.memory_space<vmem>>, %arg3: memref<3x8x128xf32, #tpu.memory_space<vmem>>, %arg4: memref<3x1x128xf32, #tpu.memory_space<vmem>>, %arg5: memref<2x32xf32, #tpu.memory_space<vmem>>, %arg6: memref<3x2x8xf32, #tpu.memory_space<vmem>>) attributes {dimension_semantics = [#tpu.dimension_semantics<parallel>, #tpu.dimension_semantics<arbitrary>], iteration_bounds = array<i64: 1, 1>, scalar_prefetch = 0 : i64, scratch_operands = 1 : i64, tpu.core_type = #tpu.core_type<tc>, window_params = [{transform_indices = @transform_0, window_bounds = array<i64: 2, 8, 256>}, {pipeline_mode = #tpu.pipeline_mode<synchronous>, transform_indices = @transform_1, window_bounds = array<i64: 3, 8, 128>}, {pipeline_mode = #tpu.pipeline_mode<synchronous>, transform_indices = @transform_2, window_bounds = array<i64: 3, 1, 128>}, {transform_indices = @transform_3, window_bounds = array<i64: 2, 32>}]} {
    %c0_i32 = arith.constant 0 : i32
    %0 = arith.cmpi eq, %arg1, %c0_i32 : i32
    %1 = arith.extui %0 : i1 to i32
    %c0_i32_0 = arith.constant 0 : i32
    %2 = arith.cmpi ne, %1, %c0_i32_0 : i32
    scf.if %2 {
      %cst = arith.constant 0xFF800000 : f32
      %35 = vector.broadcast %cst : f32 to vector<3x2x8xf32>
      %c0_20 = arith.constant 0 : index
      %c0_21 = arith.constant 0 : index
      %c0_22 = arith.constant 0 : index
      %36 = vector.load %arg6[%c0_20, %c0_21, %c0_22] : memref<3x2x8xf32, #tpu.memory_space<vmem>>, vector<3x2x8xf32>
      tpu.vector_store %arg6[%c0_20, %c0_21, %c0_22], %35 {strides = array<i32>} : memref<3x2x8xf32, #tpu.memory_space<vmem>>, vector<3x2x8xf32>,
    } else {
    }
    %c0 = arith.constant 0 : index
    %c0_1 = arith.constant 0 : index
    %c0_2 = arith.constant 0 : index
    %3 = vector.load %arg2[%c0, %c0_1, %c0_2] : memref<2x8x256xf32, #tpu.memory_space<vmem>>, vector<2x8x256xf32>
    %c256_i32 = arith.constant 256 : i32
    %4 = arith.muli %arg1, %c256_i32 : i32
    %5 = tpu.iota {dimensions = array<i32: 2>} : vector<1x1x256xi32>
    %6 = vector.broadcast %4 : i32 to vector<1x1x256xi32>
    %7 = arith.addi %6, %5 : vector<1x1x256xi32>
    %c256_i32_3 = arith.constant 256 : i32
    %8 = arith.muli %arg1, %c256_i32_3 : i32
    %c96_i32 = arith.constant 96 : i32
    %9 = arith.cmpi slt, %8, %c96_i32 : i32
    %c1_i32 = arith.constant 1 : i32
    %10 = arith.addi %arg1, %c1_i32 : i32
    %c256_i32_4 = arith.constant 256 : i32
    %11 = arith.muli %10, %c256_i32_4 : i32
    %c0_i32_5 = arith.constant 0 : i32
    %12 = arith.cmpi sgt, %11, %c0_i32_5 : i32
    %13 = arith.andi %9, %12 : i1
    %14 = arith.extui %13 : i1 to i32
    %c0_i32_6 = arith.constant 0 : i32
    %15 = arith.cmpi ne, %14, %c0_i32_6 : i32
    scf.if %15 {
      %c0_i32_20 = arith.constant 0 : i32
      %35 = vector.broadcast %c0_i32_20 : i32 to vector<1x1x256xi32>
      %36 = arith.cmpi sge, %7, %35 : vector<1x1x256xi32>
      %c96_i32_21 = arith.constant 96 : i32
      %37 = vector.broadcast %c96_i32_21 : i32 to vector<1x1x256xi32>
      %38 = arith.cmpi slt, %7, %37 : vector<1x1x256xi32>
      %39 = arith.andi %36, %38 : vector<1x1x256xi1>
      %cst = arith.constant 0xFF800000 : f32
      %40 = vector.shape_cast %39 : vector<1x1x256xi1> to vector<1x1x256xi1>
      %41 = vector.broadcast %40 : vector<1x1x256xi1> to vector<2x8x256xi1>
      %42 = vector.broadcast %cst : f32 to vector<2x8x256xf32>
      %43 = arith.select %41, %3, %42 : vector<2x8x256xi1>, vector<2x8x256xf32>
      %cst_22 = arith.constant dense<0xFF800000> : vector<2x8xf32>
      %44 = vector.multi_reduction <maximumf>, %43, %cst_22 [2] : vector<2x8x256xf32> to vector<2x8xf32>
      %c0_23 = arith.constant 0 : index
      %c0_24 = arith.constant 0 : index
      %c0_25 = arith.constant 0 : index
      %45 = vector.load %arg6[%c0_23, %c0_24, %c0_25] : memref<3x2x8xf32, #tpu.memory_space<vmem>>, vector<1x2x8xf32>
      %46 = vector.shape_cast %45 : vector<1x2x8xf32> to vector<2x8xf32>
      %47 = arith.maximumf %46, %44 : vector<2x8xf32>
      %c0_26 = arith.constant 0 : index
      %c0_27 = arith.constant 0 : index
      %c0_28 = arith.constant 0 : index
      %48 = vector.load %arg6[%c0_26, %c0_27, %c0_28] : memref<3x2x8xf32, #tpu.memory_space<vmem>>, vector<1x2x8xf32>
      %49 = vector.shape_cast %48 : vector<1x2x8xf32> to vector<2x8xf32>
      %50 = vector.shape_cast %47 : vector<2x8xf32> to vector<1x2x8xf32>
      tpu.vector_store %arg6[%c0_26, %c0_27, %c0_28], %50 {strides = array<i32>} : memref<3x2x8xf32, #tpu.memory_space<vmem>>, vector<1x2x8xf32>,
    } else {
    }
    %c256_i32_7 = arith.constant 256 : i32
    %16 = arith.muli %arg1, %c256_i32_7 : i32
    %c176_i32 = arith.constant 176 : i32
    %17 = arith.cmpi slt, %16, %c176_i32 : i32
    %c1_i32_8 = arith.constant 1 : i32
    %18 = arith.addi %arg1, %c1_i32_8 : i32
    %c256_i32_9 = arith.constant 256 : i32
    %19 = arith.muli %18, %c256_i32_9 : i32
    %c96_i32_10 = arith.constant 96 : i32
    %20 = arith.cmpi sgt, %19, %c96_i32_10 : i32
    %21 = arith.andi %17, %20 : i1
    %22 = arith.extui %21 : i1 to i32
    %c0_i32_11 = arith.constant 0 : i32
    %23 = arith.cmpi ne, %22, %c0_i32_11 : i32
    scf.if %23 {
      %c96_i32_20 = arith.constant 96 : i32
      %35 = vector.broadcast %c96_i32_20 : i32 to vector<1x1x256xi32>
      %36 = arith.cmpi sge, %7, %35 : vector<1x1x256xi32>
      %c176_i32_21 = arith.constant 176 : i32
      %37 = vector.broadcast %c176_i32_21 : i32 to vector<1x1x256xi32>
      %38 = arith.cmpi slt, %7, %37 : vector<1x1x256xi32>
      %39 = arith.andi %36, %38 : vector<1x1x256xi1>
      %cst = arith.constant 0xFF800000 : f32
      %40 = vector.shape_cast %39 : vector<1x1x256xi1> to vector<1x1x256xi1>
      %41 = vector.broadcast %40 : vector<1x1x256xi1> to vector<2x8x256xi1>
      %42 = vector.broadcast %cst : f32 to vector<2x8x256xf32>
      %43 = arith.select %41, %3, %42 : vector<2x8x256xi1>, vector<2x8x256xf32>
      %cst_22 = arith.constant dense<0xFF800000> : vector<2x8xf32>
      %44 = vector.multi_reduction <maximumf>, %43, %cst_22 [2] : vector<2x8x256xf32> to vector<2x8xf32>
      %c1 = arith.constant 1 : index
      %c0_23 = arith.constant 0 : index
      %c0_24 = arith.constant 0 : index
      %45 = vector.load %arg6[%c1, %c0_23, %c0_24] : memref<3x2x8xf32, #tpu.memory_space<vmem>>, vector<1x2x8xf32>
      %46 = vector.shape_cast %45 : vector<1x2x8xf32> to vector<2x8xf32>
      %47 = arith.maximumf %46, %44 : vector<2x8xf32>
      %c1_25 = arith.constant 1 : index
      %c0_26 = arith.constant 0 : index
      %c0_27 = arith.constant 0 : index
      %48 = vector.load %arg6[%c1_25, %c0_26, %c0_27] : memref<3x2x8xf32, #tpu.memory_space<vmem>>, vector<1x2x8xf32>
      %49 = vector.shape_cast %48 : vector<1x2x8xf32> to vector<2x8xf32>
      %50 = vector.shape_cast %47 : vector<2x8xf32> to vector<1x2x8xf32>
      tpu.vector_store %arg6[%c1_25, %c0_26, %c0_27], %50 {strides = array<i32>} : memref<3x2x8xf32, #tpu.memory_space<vmem>>, vector<1x2x8xf32>,
    } else {
    }
    %c256_i32_12 = arith.constant 256 : i32
    %24 = arith.muli %arg1, %c256_i32_12 : i32
    %c256_i32_13 = arith.constant 256 : i32
    %25 = arith.cmpi slt, %24, %c256_i32_13 : i32
    %c1_i32_14 = arith.constant 1 : i32
    %26 = arith.addi %arg1, %c1_i32_14 : i32
    %c256_i32_15 = arith.constant 256 : i32
    %27 = arith.muli %26, %c256_i32_15 : i32
    %c176_i32_16 = arith.constant 176 : i32
    %28 = arith.cmpi sgt, %27, %c176_i32_16 : i32
    %29 = arith.andi %25, %28 : i1
    %30 = arith.extui %29 : i1 to i32
    %c0_i32_17 = arith.constant 0 : i32
    %31 = arith.cmpi ne, %30, %c0_i32_17 : i32
    scf.if %31 {
      %c176_i32_20 = arith.constant 176 : i32
      %35 = vector.broadcast %c176_i32_20 : i32 to vector<1x1x256xi32>
      %36 = arith.cmpi sge, %7, %35 : vector<1x1x256xi32>
      %c256_i32_21 = arith.constant 256 : i32
      %37 = vector.broadcast %c256_i32_21 : i32 to vector<1x1x256xi32>
      %38 = arith.cmpi slt, %7, %37 : vector<1x1x256xi32>
      %39 = arith.andi %36, %38 : vector<1x1x256xi1>
      %cst = arith.constant 0xFF800000 : f32
      %40 = vector.shape_cast %39 : vector<1x1x256xi1> to vector<1x1x256xi1>
      %41 = vector.broadcast %40 : vector<1x1x256xi1> to vector<2x8x256xi1>
      %42 = vector.broadcast %cst : f32 to vector<2x8x256xf32>
      %43 = arith.select %41, %3, %42 : vector<2x8x256xi1>, vector<2x8x256xf32>
      %cst_22 = arith.constant dense<0xFF800000> : vector<2x8xf32>
      %44 = vector.multi_reduction <maximumf>, %43, %cst_22 [2] : vector<2x8x256xf32> to vector<2x8xf32>
      %c2 = arith.constant 2 : index
      %c0_23 = arith.constant 0 : index
      %c0_24 = arith.constant 0 : index
      %45 = vector.load %arg6[%c2, %c0_23, %c0_24] : memref<3x2x8xf32, #tpu.memory_space<vmem>>, vector<1x2x8xf32>
      %46 = vector.shape_cast %45 : vector<1x2x8xf32> to vector<2x8xf32>
      %47 = arith.maximumf %46, %44 : vector<2x8xf32>
      %c2_25 = arith.constant 2 : index
      %c0_26 = arith.constant 0 : index
      %c0_27 = arith.constant 0 : index
      %48 = vector.load %arg6[%c2_25, %c0_26, %c0_27] : memref<3x2x8xf32, #tpu.memory_space<vmem>>, vector<1x2x8xf32>
      %49 = vector.shape_cast %48 : vector<1x2x8xf32> to vector<2x8xf32>
      %50 = vector.shape_cast %47 : vector<2x8xf32> to vector<1x2x8xf32>
      tpu.vector_store %arg6[%c2_25, %c0_26, %c0_27], %50 {strides = array<i32>} : memref<3x2x8xf32, #tpu.memory_space<vmem>>, vector<1x2x8xf32>,
    } else {
    }
    %c0_i32_18 = arith.constant 0 : i32
    %32 = arith.cmpi eq, %arg1, %c0_i32_18 : i32
    %33 = arith.extui %32 : i1 to i32
    %c0_i32_19 = arith.constant 0 : i32
    %34 = arith.cmpi ne, %33, %c0_i32_19 : i32
    scf.if %34 {
      %c0_20 = arith.constant 0 : index
      %c0_21 = arith.constant 0 : index
      %c0_22 = arith.constant 0 : index
      %35 = vector.load %arg6[%c0_20, %c0_21, %c0_22] : memref<3x2x8xf32, #tpu.memory_space<vmem>>, vector<1x2x8xf32>
      %36 = vector.shape_cast %35 : vector<1x2x8xf32> to vector<2x8xf32>
      %c0_23 = arith.constant 0 : index
      %c0_24 = arith.constant 0 : index
      %c0_25 = arith.constant 0 : index
      %37 = vector.load %arg3[%c0_23, %c0_24, %c0_25] : memref<3x8x128xf32, #tpu.memory_space<vmem>>, vector<1x8x128xf32>
      %38 = vector.shape_cast %37 : vector<1x8x128xf32> to vector<8x128xf32>
      %cst = arith.constant dense<0.000000e+00> : vector<2x128xf32>
      %39 = tpu.matmul %36, %38, %cst {dimension_numbers = #tpu.dot_dimension_numbers<[1], [0], [0], [1], [0, 0, 1, 1], [], []>} : vector<2x8xf32>, vector<8x128xf32>, vector<2x128xf32> -> vector<2x128xf32>
      %c0_26 = arith.constant 0 : index
      %c0_27 = arith.constant 0 : index
      %c0_28 = arith.constant 0 : index
      %40 = vector.load %arg4[%c0_26, %c0_27, %c0_28] : memref<3x1x128xf32, #tpu.memory_space<vmem>>, vector<1x1x128xf32>
      %41 = vector.shape_cast %40 : vector<1x1x128xf32> to vector<1x128xf32>
      %42 = vector.broadcast %41 : vector<1x128xf32> to vector<2x128xf32>
      %43 = arith.addf %39, %42 : vector<2x128xf32>
      %44 = vector.extract_strided_slice %43 {offsets = [0, 0], sizes = [2, 11], strides = [1, 1]} : vector<2x128xf32> to vector<2x11xf32>
      %c0_29 = arith.constant 0 : index
      %c0_30 = arith.constant 0 : index
      %45 = vector.load %arg5[%c0_29, %c0_30] : memref<2x32xf32, #tpu.memory_space<vmem>>, vector<2x11xf32>
      tpu.vector_store %arg5[%c0_29, %c0_30], %44 {strides = array<i32>} : memref<2x32xf32, #tpu.memory_space<vmem>>, vector<2x11xf32>,
      %c1 = arith.constant 1 : index
      %c0_31 = arith.constant 0 : index
      %c0_32 = arith.constant 0 : index
      %46 = vector.load %arg6[%c1, %c0_31, %c0_32] : memref<3x2x8xf32, #tpu.memory_space<vmem>>, vector<1x2x8xf32>
      %47 = vector.shape_cast %46 : vector<1x2x8xf32> to vector<2x8xf32>
      %c1_33 = arith.constant 1 : index
      %c0_34 = arith.constant 0 : index
      %c0_35 = arith.constant 0 : index
      %48 = vector.load %arg3[%c1_33, %c0_34, %c0_35] : memref<3x8x128xf32, #tpu.memory_space<vmem>>, vector<1x8x128xf32>
      %49 = vector.shape_cast %48 : vector<1x8x128xf32> to vector<8x128xf32>
      %cst_36 = arith.constant dense<0.000000e+00> : vector<2x128xf32>
      %50 = tpu.matmul %47, %49, %cst_36 {dimension_numbers = #tpu.dot_dimension_numbers<[1], [0], [0], [1], [0, 0, 1, 1], [], []>} : vector<2x8xf32>, vector<8x128xf32>, vector<2x128xf32> -> vector<2x128xf32>
      %c1_37 = arith.constant 1 : index
      %c0_38 = arith.constant 0 : index
      %c0_39 = arith.constant 0 : index
      %51 = vector.load %arg4[%c1_37, %c0_38, %c0_39] : memref<3x1x128xf32, #tpu.memory_space<vmem>>, vector<1x1x128xf32>
      %52 = vector.shape_cast %51 : vector<1x1x128xf32> to vector<1x128xf32>
      %53 = vector.broadcast %52 : vector<1x128xf32> to vector<2x128xf32>
      %54 = arith.addf %50, %53 : vector<2x128xf32>
      %55 = vector.extract_strided_slice %54 {offsets = [0, 0], sizes = [2, 11], strides = [1, 1]} : vector<2x128xf32> to vector<2x11xf32>
      %c0_40 = arith.constant 0 : index
      %c11 = arith.constant 11 : index
      %56 = vector.load %arg5[%c0_40, %c11] : memref<2x32xf32, #tpu.memory_space<vmem>>, vector<2x11xf32>
      tpu.vector_store %arg5[%c0_40, %c11], %55 {strides = array<i32>} : memref<2x32xf32, #tpu.memory_space<vmem>>, vector<2x11xf32>,
      %c2 = arith.constant 2 : index
      %c0_41 = arith.constant 0 : index
      %c0_42 = arith.constant 0 : index
      %57 = vector.load %arg6[%c2, %c0_41, %c0_42] : memref<3x2x8xf32, #tpu.memory_space<vmem>>, vector<1x2x8xf32>
      %58 = vector.shape_cast %57 : vector<1x2x8xf32> to vector<2x8xf32>
      %c2_43 = arith.constant 2 : index
      %c0_44 = arith.constant 0 : index
      %c0_45 = arith.constant 0 : index
      %59 = vector.load %arg3[%c2_43, %c0_44, %c0_45] : memref<3x8x128xf32, #tpu.memory_space<vmem>>, vector<1x8x128xf32>
      %60 = vector.shape_cast %59 : vector<1x8x128xf32> to vector<8x128xf32>
      %cst_46 = arith.constant dense<0.000000e+00> : vector<2x128xf32>
      %61 = tpu.matmul %58, %60, %cst_46 {dimension_numbers = #tpu.dot_dimension_numbers<[1], [0], [0], [1], [0, 0, 1, 1], [], []>} : vector<2x8xf32>, vector<8x128xf32>, vector<2x128xf32> -> vector<2x128xf32>
      %c2_47 = arith.constant 2 : index
      %c0_48 = arith.constant 0 : index
      %c0_49 = arith.constant 0 : index
      %62 = vector.load %arg4[%c2_47, %c0_48, %c0_49] : memref<3x1x128xf32, #tpu.memory_space<vmem>>, vector<1x1x128xf32>
      %63 = vector.shape_cast %62 : vector<1x1x128xf32> to vector<1x128xf32>
      %64 = vector.broadcast %63 : vector<1x128xf32> to vector<2x128xf32>
      %65 = arith.addf %61, %64 : vector<2x128xf32>
      %66 = vector.extract_strided_slice %65 {offsets = [0, 0], sizes = [2, 10], strides = [1, 1]} : vector<2x128xf32> to vector<2x10xf32>
      %c0_50 = arith.constant 0 : index
      %c22 = arith.constant 22 : index
      %67 = vector.load %arg5[%c0_50, %c22] : memref<2x32xf32, #tpu.memory_space<vmem>>, vector<2x10xf32>
      tpu.vector_store %arg5[%c0_50, %c22], %66 {strides = array<i32>} : memref<2x32xf32, #tpu.memory_space<vmem>>, vector<2x10xf32>,
    } else {
    }
    return
  }
  func.func @transform_0(%arg0: i32, %arg1: i32) -> (i32, i32, i32) {
    %c0_i32 = arith.constant 0 : i32
    %c0_i32_0 = arith.constant 0 : i32
    return %arg0, %c0_i32, %arg1 : i32, i32, i32
  }
  func.func @transform_1(%arg0: i32, %arg1: i32) -> (i32, i32, i32) {
    %c0_i32 = arith.constant 0 : i32
    %c0_i32_0 = arith.constant 0 : i32
    %c0_i32_1 = arith.constant 0 : i32
    %c0_i32_2 = arith.constant 0 : i32
    return %c0_i32, %c0_i32_0, %c0_i32_1 : i32, i32, i32
  }
  func.func @transform_2(%arg0: i32, %arg1: i32) -> (i32, i32, i32) {
    %c0_i32 = arith.constant 0 : i32
    %c0_i32_0 = arith.constant 0 : i32
    %c0_i32_1 = arith.constant 0 : i32
    %c0_i32_2 = arith.constant 0 : i32
    return %c0_i32, %c0_i32_0, %c0_i32_1 : i32, i32, i32
  }
  func.func @transform_3(%arg0: i32, %arg1: i32) -> (i32, i32) {
    %c0_i32 = arith.constant 0 : i32
    %c0_i32_0 = arith.constant 0 : i32
    return %arg0, %c0_i32 : i32, i32
  }
}

</mosaic_0001>

<bundles_post_ra>
// kernel: tpu_custom_call.1
= control target key start
LH: loop header
LB: loop body
LE: loop exit
PB: predicated region body
PF: predicated region fallthrough
CT: control target
= control target key end

     0   :  { %8 = vsyncpa [#allocation4], 0  ;;  %s658_s0 = inlined_call_operand.hbm [shape: f32[2,8,256], index: 0, kind: input, shape index: {}]   ;;  %s659_s1 = inlined_call_operand.hbm [shape: f32[3,8,128], index: 1, kind: input, shape index: {}]   ;;  %s660_s2 = inlined_call_operand.vmem [shape: f32[3,1,128], index: 2, kind: input, shape index: {}]   ;;  %s661_s3 = inlined_call_operand.hbm [shape: f32[2,32], index: 3, kind: output, shape index: {}]  }
   0x1   :  { %9 = vsyncpa [#allocation7], 0 }
   0x2   :  { %10 = vsyncpa [#allocation5], 0  ;;  %s588_s12 = smov [#allocation3]  }
   0x3   :  { %s16_s13 = sshll.u32 %s588_s12, 4  ;;  %s17_s13 = int_to_ptr.vmem [resolvable:$true] %s16_s13 }
   0x4   :  { %s530_s14 = scalar_lea.vmem %s17_s13, 512  ;;  %p535_p1 = scmp.lt.s32.totalorder %s17_s13, %s17_s13 }
   0x5   :  { %p531_p0 = scmp.ne.s32.totalorder %s17_s13, %s530_s14  ;;  %p536_p2 = scmp.lt.s32.totalorder %s530_s14, %s530_s14 }
   0x7   :  { %p537_p3 = por %p536_p2, %p535_p1 }
   0x9   :  { %p538_p4 = pnand %p537_p3, %p531_p0 }
   0xb   :  { %541 = shalt.err (!%p538_p4)
}
   0xc   :  { %s589_s15 = smov 256   ;;  %s590_s16 = smov 16  }
   0xd   :  { %22 = dma.hbm_to_vmem [thread:$0]  %s658_s0, 512, %s17_s13, [#allocation4], %s589_s15, %s589_s15, %s590_s16  }
   0xe   :  { %s591_s19 = smov [#allocation6]  }
   0xf   :  { %s28_s20 = sshll.u32 %s591_s19, 4  ;;  %s29_s20 = int_to_ptr.vmem [resolvable:$true] %s28_s20 }
  0x10   :  { %s550_s21 = scalar_lea.vmem %s29_s20, 384  ;;  %p555_p6 = scmp.lt.s32.totalorder %s29_s20, %s29_s20 }
  0x11   :  { %p551_p5 = scmp.ne.s32.totalorder %s29_s20, %s550_s21  ;;  %p556_p7 = scmp.lt.s32.totalorder %s550_s21, %s550_s21 }
  0x13   :  { %p557_p8 = por %p556_p7, %p555_p6 }
  0x15   :  { %p558_p9 = pnand %p557_p8, %p551_p5 }
  0x17   :  { %561 = shalt.err (!%p558_p9)
}
  0x18   :  { %s592_s22 = smov 128   ;;  %s593_s23 = smov 8  }
  0x19   :  { %34 = dma.hbm_to_vmem [thread:$0]  %s659_s1, 384, %s29_s20, [#allocation7], %s592_s22, %s592_s22, %s593_s23  }
  0x1a   :  { %582 = dma.done.wait [#allocation4], 512  }
  0x1b   :  { %583 = vsyncadd [#allocation4], 4294966784 }
  0x1c   :  { %584 = dma.done.wait [#allocation7], 384  }
  0x1d   :  { %585 = vsyncadd [#allocation7], 4294966912  ;;  %v56_v0 = vlaneseq  ;;  %v51_v5 = vld [vmem:[#allocation3] sm:$0xff]  ;;  %v52_v6 = vld [vmem:[#allocation3 + $0x8] sm:$0xff]  ;;  %vm47_vm4 = vcmask 58368   ;;  %v594_v19 = vmov -inf  }
  0x1e   :  { %v53_v7 = vld [vmem:[#allocation3 + $0x10] sm:$0xff]  ;;  %v54_v11 = vld [vmem:[#allocation3 + $0x18] sm:$0xff]  ;;  %48 = vst.msk [vmem:[#allocation2] sm:$0x3] %vm47_vm4, %v594_v19  ;;  %49 = vst.msk [vmem:[#allocation2 + $0x2] sm:$0x3] %vm47_vm4, %v594_v19 }
  0x1f   :  { %v57_v1 = vand.u32 127, %v56_v0  ;;  %v94_v2 = vshrl.u32 %v56_v0, 7  ;;  %50 = vst.msk [vmem:[#allocation2 + $0x4] sm:$0x3] %vm47_vm4, %v594_v19  ;;  %v595_v20 = vmov 0.0   ;;  %v199_v21 = vld [vmem:[#allocation6] sm:$0xff] }
  0x20   :  { %495 = vmatprep.subr.mxu0 %v595_v20  ;;  %500 = vmatprep.subr.mxu1 %v595_v20  ;;  %vm596_vm5 = vmmov 0   ;;  %v286_v22 = vld [vmem:[#allocation6 + $0x8] sm:$0xff]  ;;  %vm101_vm6 = vcmask 1041409   ;;  %vm207_vm7 = vcmask 64512   ;;  %v377_v44 = vld [vmem:[#allocation6 + $0x10] sm:$0xff]  ;;  %vm281_vm8 = vcmask 82944  }
  0x21   :  { %v626_v3 = vsub.s32 %v57_v1, %v94_v2  ;;  %v58_v4 = vadd.s32 128, %v57_v1  ;;  %vm72_vm0 = vcmp.lt.s32.totalorder %v57_v1, 96  ;;  %vm113_vm1 = vcmp.ge.s32.totalorder %v57_v1, 96  ;;  %496 = vmatpush3.msra.mxu0 %v199_v21  ;;  %497 = vmatprep.mubr.msk.f32.mxu0 %vm596_vm5, %v595_v20  ;;  %v481_v48 = vld [vmem:[%s660_s2] ss:$0 sm:$0xff]  ;;  %s597_s30 = smov 11  }
  0x22   :  { %v80_v8 = vsel %vm72_vm0, %v51_v5, -inf  ;;  %v123_v9 = vsel %vm113_vm1, %v51_v5, -inf  ;;  %v125_v13 = vsel %vm113_vm1, %v53_v7, -inf  ;;  %v82_v15 = vsel %vm72_vm0, %v53_v7, -inf  ;;  %502 = vmatprep.mubr.msk.f32.mxu1 %vm596_vm5, %v595_v20  ;;  %505 = vmatprep.subr.mxu0 %v595_v20  ;;  %v484_v50 = vld [vmem:[%s660_s2 + $0x1] ss:$0 sm:$0xff] }
  0x23   :  { %vm116_vm2 = vcmp.lt.s32.totalorder %v58_v4, 176  ;;  %85 = vmax.xlane.f32.xlu0 %v80_v8  ;;  %vm158_vm3 = vcmp.ge.s32.totalorder %v58_v4, 176  ;;  %501 = vmatpush3.msra.mxu1 %v286_v22  ;;  %v487_v56 = vld [vmem:[%s660_s2 + $0x2] ss:$0 sm:$0xff]  ;;  %s598_s4 = smov 22   ;;  %vm372_vm9 = vcmask 173144  }
  0x24   :  { %v124_v10 = vsel %vm116_vm2, %v52_v6, -inf  ;;  %v126_v14 = vsel %vm116_vm2, %v54_v11, -inf  ;;  %v168_v17 = vsel %vm158_vm3, %v52_v6, -inf  ;;  %v170_v18 = vsel %vm158_vm3, %v54_v11, -inf  ;;  %s599_s5 = smov [#allocation8]  }
  0x25   :  { %v127_v12 = vmax.f32 %v123_v9, %v124_v10  ;;  %v130_v16 = vmax.f32 %v125_v13, %v126_v14  ;;  %v90_v27 = vld [vmem:[#allocation2] sm:$0x3]  ;;  %v134_v32 = vld [vmem:[#allocation2 + $0x2] sm:$0x3]  ;;  %s471_s6 = sshll.u32 %s599_s5, 4  ;;  %vm463_vm10 = vcmask 255152   ;;  %s472_s6 = int_to_ptr.vmem [resolvable:$true] %s471_s6 }
  0x26   :  { %v178_v41 = vld [vmem:[#allocation2 + $0x4] sm:$0x3]  ;;  %s562_s7 = scalar_lea.vmem %s472_s6, 32  ;;  %p567_p11 = scmp.lt.s32.totalorder %s472_s6, %s472_s6 }
  0x27   :  { %128 = vmax.xlane.f32.xlu1 %v127_v12  ;;  %88 = vmax.xlane.f32.xlu0 %v82_v15  ;;  %p563_p10 = scmp.ne.s32.totalorder %s472_s6, %s562_s7  ;;  %p568_p12 = scmp.lt.s32.totalorder %s562_s7, %s562_s7 }
  0x29   :  { %p569_p13 = por %p568_p12, %p567_p11 }
  0x2b   :  { %131 = vmax.xlane.f32.xlu1 %v130_v16  ;;  %172 = vmax.xlane.f32.xlu0 %v168_v17  ;;  %p570_p0 = pnand %p569_p13, %p563_p10 }
  0x2f   :  { %175 = vmax.xlane.f32.xlu1 %v170_v18 }
  0xac   :  { %v86_v23 = vpop.xlane.xlu0 %85 }
  0xad   :  { %v96_v26 = vrot.slane %v86_v23, %v626_v3 }
  0xb0   :  { %v129_v24 = vpop.xlane.xlu1 %128  ;;  %v89_v25 = vpop.xlane.xlu0 %88 }
  0xb1   :  { %v100_v28 = vrot.slane %v89_v25, %v626_v3  ;;  %v140_v30 = vrot.slane %v129_v24, %v626_v3 }
  0xb3   :  { %v102_v31 = vsel %vm101_vm6, %v100_v28, %v96_v26 }
  0xb4   :  { %v132_v29 = vpop.xlane.xlu1 %131  ;;  %v104_v34 = vmax.f32 %v90_v27, %v102_v31  ;;  %v173_v35 = vpop.xlane.xlu0 %172 }
  0xb5   :  { %v144_v33 = vrot.slane %v132_v29, %v626_v3  ;;  %v184_v37 = vrot.slane %v173_v35, %v626_v3 }
  0xb6   :  { %106 = vst.msk [vmem:[#allocation2] sm:$0x3] %vm47_vm4, %v104_v34 }
  0xb7   :  { %v146_v36 = vsel %vm101_vm6, %v144_v33, %v140_v30 }
  0xb8   :  { %v148_v38 = vmax.f32 %v134_v32, %v146_v36  ;;  %v176_v39 = vpop.xlane.xlu1 %175 }
  0xb9   :  { %v188_v40 = vrot.slane %v176_v39, %v626_v3 }
  0xba   :  { %150 = vst.msk [vmem:[#allocation2 + $0x2] sm:$0x3] %vm47_vm4, %v148_v38 }
  0xbb   :  { %v190_v42 = vsel %vm101_vm6, %v188_v40, %v184_v37 }
  0xbc   :  { %v192_v43 = vmax.f32 %v178_v41, %v190_v42 }
  0xbd   :  { %v198_v45 = vld [vmem:[#allocation2] sm:$0x3] }
  0xbe   :  { %194 = vst.msk [vmem:[#allocation2 + $0x4] sm:$0x3] %vm47_vm4, %v192_v43  ;;  %498 = vmatmul.mubr.msk.f32.vlgmr.msra.gmra.mxu0 %vm207_vm7, %v198_v45 }
  0xbf   :  { %506 = vmatpush3.msra.mxu0 %v377_v44  ;;  %507 = vmatprep.mubr.msk.f32.mxu0 %vm596_vm5, %v595_v20 }
  0xc1   :  { %v284_v46 = vld [vmem:[#allocation2 + $0x2] sm:$0x3] }
  0xc2   :  { %503 = vmatmul.mubr.msk.f32.vlgmr.msra.gmra.mxu1 %vm207_vm7, %v284_v46 }
  0xc5   :  { %v375_v47 = vld [vmem:[#allocation2 + $0x4] sm:$0x3] }
  0xc6   :  { %508 = vmatmul.mubr.msk.f32.vlgmr.msra.gmra.mxu0 %vm207_vm7, %v375_v47 }
 0x17e   :  { %v277_v49 = vpop.f32.mrf.mxu0 }
 0x17f   :  { %v278_v51 = vadd.f32 %v481_v48, %v277_v49 }
 0x180   :  { %v499_v52 = vpop.f32.mrf.mxu0 }
 0x181   :  { %282 = vst.msk [vmem:[#allocation8] sm:$0x3] %vm281_vm8, %v278_v51 }
 0x182   :  { %v364_v53 = vpop.f32.mrf.mxu1 }
 0x183   :  { %v365_v54 = vadd.f32 %v484_v50, %v364_v53 }
 0x184   :  { %v504_v55 = vpop.f32.mrf.mxu1 }
 0x185   :  { %369 = vrot.lane.b32.xlu0 %v365_v54, %s597_s30 }
 0x186   :  { %v455_v57 = vpop.f32.mrf.mxu0 }
 0x187   :  { %v456_v58 = vadd.f32 %v487_v56, %v455_v57 }
 0x188   :  { %v509_v59 = vpop.f32.mrf.mxu0 }
 0x189   :  { %460 = vrot.lane.b32.xlu1 %v456_v58, %s598_s4 }
 0x1f7   :  { %v370_v60 = vpop.permute.xlu0 %369 }
 0x1f8   :  { %373 = vst.msk [vmem:[#allocation8] sm:$0x3] %vm372_vm9, %v370_v60 }
 0x1fb   :  { %v461_v61 = vpop.permute.xlu1 %460 }
 0x1fc   :  { %464 = vst.msk [vmem:[#allocation8] sm:$0x3] %vm463_vm10, %v461_v61 }
 0x1fd   :  { %573 = shalt.err (!%p570_p0)
}
 0x1fe   :  { %474 = dma.vmem_to_hbm [thread:$0]  %s472_s6, 32, %s661_s3, [#allocation5]  }
 0x1ff   :  { %586 = dma.done.wait [#allocation5], 32  }
 0x200   :  { %587 = vsyncadd [#allocation5], 4294967264 }
 0x201   :  { %478 = vsyncpa [#allocation4], 1 }
 0x202   :  { %479 = vsyncpa [#allocation7], 1 }
 0x203   :  { %480 = vsyncpa [#allocation5], 1 }

</bundles_post_ra>
